<compile_context>
chip_gen: v6e
topology: v6e:2x2x1
jax: 0.10.0
libtpu: 0.0.40
codegen_flags: <defaults>
</compile_context>

<pallas_src>
import functools
import math

import jax
import jax.numpy as jnp
from jax import lax
from jax.experimental import pallas as pl
from jax.experimental.pallas import tpu as pltpu

FC_UNITS = 1024


def _maxpool2(h):
    """F.max_pool1d(kernel_size=2, stride=2) along axis 0 of (L, C) via selection matmuls."""
    L = h.shape[0]
    Lh = L // 2
    col = lax.broadcasted_iota(jnp.int32, (Lh, L), 1)
    row = lax.broadcasted_iota(jnp.int32, (Lh, L), 0)
    s_even = jnp.where(col == 2 * row, 1.0, 0.0).astype(jnp.float32)
    s_odd = jnp.where(col == 2 * row + 1, 1.0, 0.0).astype(jnp.float32)
    even = jnp.dot(s_even, h, preferred_element_type=jnp.float32)
    odd = jnp.dot(s_odd, h, preferred_element_type=jnp.float32)
    return jnp.maximum(even, odd)


def _convnet_kernel(*refs, num_conv):
    # refs = (x, [w_i, b_i]*num_conv, wfc, bfc, wout, bout, out, [pad_scratch_i]*num_conv)
    n = 1 + 2 * num_conv
    x_ref = refs[0]
    conv_refs = refs[1:n]
    wfc_ref, bfc_ref, wout_ref, bout_ref, o_ref = refs[n:n + 5]
    pad_refs = refs[n + 5:]

    h = x_ref[0]                                        # (L0, C_in): seq on sublanes
    for i in range(num_conv):
        w_ref = conv_refs[2 * i]                        # (K, C_in, C_out)
        b_ref = conv_refs[2 * i + 1]                    # (1, C_out)
        pad_ref = pad_refs[i]                           # (lm + L_in + pad, C_in) scratch
        K, _, c_out = w_ref.shape
        l_in = h.shape[0]
        pad = K // 2
        lm = ((pad + 7) // 8) * 8                       # left margin, sublane-aligned
        l_out = l_in + 2 * pad - K + 1                  # == l_in for odd K

        # Zero-padded copy of the activation in VMEM scratch (aligned store at lm).
        pad_ref[...] = jnp.zeros(pad_ref.shape, jnp.float32)
        pad_ref[pl.ds(lm, l_in), :] = h

        # Conv1d (cross-correlation) as a sum over kernel taps of small MXU matmuls.
        acc = jnp.zeros((l_out, c_out), jnp.float32)
        for k in range(K):
            acc = acc + jnp.dot(pad_ref[pl.ds(lm - pad + k, l_out), :], w_ref[k],
                                preferred_element_type=jnp.float32)
        h = jnp.maximum(acc + b_ref[...], 0.0)          # bias + ReLU
        h = _maxpool2(h)                                # (l_out // 2, C_out)

    # fc_layer: contract (L_f, C_f) features against W arranged as (L_f, C_f, 1024).
    l_f = wfc_ref.shape[0]
    fc_units = wfc_ref.shape[2]
    acc = jnp.zeros((1, fc_units), jnp.float32)
    for l in range(l_f):
        acc = acc + jnp.dot(h[l:l + 1, :], wfc_ref[l],
                            preferred_element_type=jnp.float32)
    h_fc = jnp.maximum(acc + bfc_ref[...], 0.0)         # (1, 1024)

    # output_layer (1024 -> 1): elementwise multiply + lane reduction.
    y = jnp.sum(h_fc * wout_ref[...], axis=1, keepdims=True) + bout_ref[...]
    o_ref[0] = y                                        # (1, 1) block of (B, 1, 1) output


def convnet1d_forward(params, x, input_channels, num_filters, kernel_sizes):
    if len(num_filters) != len(kernel_sizes):
        raise ValueError("The lengths of 'num_filters' and 'kernel_sizes' must match.")
    B = x.shape[0]
    xr = x.reshape(B, input_channels, -1)                       # torch: x.reshape(B, 4, -1)
    L0 = xr.shape[2]
    x_lc = jnp.transpose(xr, (0, 2, 1)).astype(jnp.float32)     # (B, L, C): seq -> sublanes

    operands = [x_lc]
    in_specs = [pl.BlockSpec((1, L0, input_channels), lambda b: (b, 0, 0))]
    scratch_shapes = []

    L, C = L0, input_channels
    for i, (nf, ks) in enumerate(zip(num_filters, kernel_sizes)):
        w = jnp.transpose(params[f"conv{i}_w"], (2, 1, 0)).astype(jnp.float32)  # (K, Cin, Cout)
        bvec = params[f"conv{i}_b"].reshape(1, nf).astype(jnp.float32)
        operands += [w, bvec]
        in_specs += [pl.BlockSpec((ks, C, nf), lambda b: (0, 0, 0)),
                     pl.BlockSpec((1, nf), lambda b: (0, 0))]
        pad = ks // 2
        lm = ((pad + 7) // 8) * 8
        scratch_shapes.append(pltpu.VMEM((lm + L + pad, C), jnp.float32))
        L = (L + 2 * pad - ks + 1) // 2                         # conv (same for odd K) + pool
        C = nf

    fc_units = params["fc_w"].shape[0]
    # torch flattens (B, C, L) with index c*L + l; rearrange fc weight to (L, C, fc_units).
    wfc = jnp.transpose(params["fc_w"].reshape(fc_units, C, L), (2, 1, 0)).astype(jnp.float32)
    bfc = params["fc_b"].reshape(1, fc_units).astype(jnp.float32)
    wout = params["out_w"].reshape(1, fc_units).astype(jnp.float32)
    bout = params["out_b"].reshape(1, 1).astype(jnp.float32)
    operands += [wfc, bfc, wout, bout]
    in_specs += [pl.BlockSpec((L, C, fc_units), lambda b: (0, 0, 0)),
                 pl.BlockSpec((1, fc_units), lambda b: (0, 0)),
                 pl.BlockSpec((1, fc_units), lambda b: (0, 0)),
                 pl.BlockSpec((1, 1), lambda b: (0, 0))]

    kernel = functools.partial(_convnet_kernel, num_conv=len(num_filters))
    out = pl.pallas_call(
        kernel,
        out_shape=jax.ShapeDtypeStruct((B, 1, 1), jnp.float32),
        grid_spec=pltpu.PrefetchScalarGridSpec(
            num_scalar_prefetch=0,
            grid=(B,),
            in_specs=in_specs,
            out_specs=pl.BlockSpec((1, 1, 1), lambda b: (b, 0, 0)),
            scratch_shapes=scratch_shapes,
        ),
        compiler_params=pltpu.CompilerParams(
            dimension_semantics=("parallel",)),
    )(*operands)
    return out[:, 0, 0]                                          # squeeze(1)


# ----------------------------------------------------------------------------
# Parameter construction (mirrors _init_weights) and pure-JAX reference.
# ----------------------------------------------------------------------------
def _xavier_uniform(key, shape, fan_in, fan_out):
    bound = math.sqrt(6.0 / (fan_in + fan_out))
    return jax.random.uniform(key, shape, jnp.float32, -bound, bound)


def init_params(key, input_channels, seq_length, num_filters, kernel_sizes):
    params = {}
    keys = jax.random.split(key, len(num_filters) + 2)
    C, L = input_channels, seq_length
    for i, (nf, ks) in enumerate(zip(num_filters, kernel_sizes)):
        params[f"conv{i}_w"] = _xavier_uniform(keys[i], (nf, C, ks), C * ks, nf * ks)
        params[f"conv{i}_b"] = jnp.zeros((nf,), jnp.float32)     # nn.init.zeros_
        C = nf
        L = (L + 2 * (ks // 2) - ks + 1) // 2
    feat = C * L
    params["fc_w"] = _xavier_uniform(keys[-2], (FC_UNITS, feat), feat, FC_UNITS)
    params["fc_b"] = jnp.zeros((FC_UNITS,), jnp.float32)
    params["out_w"] = _xavier_uniform(keys[-1], (1, FC_UNITS), FC_UNITS, 1)
    params["out_b"] = jnp.zeros((1,), jnp.float32)
    return params


def forward_ref(params, x, input_channels, num_filters, kernel_sizes):
    B = x.shape[0]
    h = x.reshape(B, input_channels, -1)
    for i, (nf, ks) in enumerate(zip(num_filters, kernel_sizes)):
        h = lax.conv_general_dilated(
            h, params[f"conv{i}_w"], window_strides=(1,),
            padding=[(ks // 2, ks // 2)],
            dimension_numbers=("NCH", "OIH", "NCH"),
            precision=lax.Precision.HIGHEST)
        h = jnp.maximum(h + params[f"conv{i}_b"][None, :, None], 0.0)
        L = h.shape[2]
        h = h[:, :, :(L // 2) * 2].reshape(B, h.shape[1], L // 2, 2).max(axis=3)
    h = h.reshape(B, -1)
    h = jnp.maximum(jnp.dot(h, params["fc_w"].T, precision=lax.Precision.HIGHEST)
                    + params["fc_b"], 0.0)
    y = jnp.dot(h, params["out_w"].T, precision=lax.Precision.HIGHEST) + params["out_b"]
    return y[:, 0]


if __name__ == "__main__":
    INPUT_CHANNELS = 4        # forward() hard-codes reshape(B, 4, -1)
    SEQ_LENGTH = 16
    NUM_FILTERS = [8, 16]
    KERNEL_SIZES = [3, 5]     # odd kernel sizes (consistent with the __init__ arithmetic)
    BATCH = 2

    key = jax.random.PRNGKey(0)
    kp, kx = jax.random.split(key)
    params = init_params(kp, INPUT_CHANNELS, SEQ_LENGTH, NUM_FILTERS, KERNEL_SIZES)
    x = jax.random.normal(kx, (BATCH, INPUT_CHANNELS * SEQ_LENGTH), jnp.float32)

    out = jax.block_until_ready(
        convnet1d_forward(params, x, INPUT_CHANNELS, NUM_FILTERS, KERNEL_SIZES))
    ref = forward_ref(params, x, INPUT_CHANNELS, NUM_FILTERS, KERNEL_SIZES)

    assert out.shape == (BATCH,)
    assert jnp.allclose(out, ref, atol=1e-3, rtol=1e-3), (out, ref)
    print("KERNEL_OK")
</pallas_src>

<mosaic_0001>
module attributes {stable_mosaic.version = 11 : i64} {
  func.func @_convnet_kernel(%arg0: i32, %arg1: memref<1x16x4xf32, #tpu.memory_space<vmem>>, %arg2: memref<3x4x8xf32, #tpu.memory_space<vmem>>, %arg3: memref<1x8xf32, #tpu.memory_space<vmem>>, %arg4: memref<5x8x16xf32, #tpu.memory_space<vmem>>, %arg5: memref<1x16xf32, #tpu.memory_space<vmem>>, %arg6: memref<4x16x1024xf32, #tpu.memory_space<vmem>>, %arg7: memref<1x1024xf32, #tpu.memory_space<vmem>>, %arg8: memref<1x1024xf32, #tpu.memory_space<vmem>>, %arg9: memref<1x1xf32, #tpu.memory_space<vmem>>, %arg10: memref<1x1x1xf32, #tpu.memory_space<vmem>>, %arg11: memref<25x4xf32, #tpu.memory_space<vmem>>, %arg12: memref<18x8xf32, #tpu.memory_space<vmem>>) attributes {dimension_semantics = [#tpu.dimension_semantics<parallel>], iteration_bounds = array<i64: 2>, scalar_prefetch = 0 : i64, scratch_operands = 2 : i64, tpu.core_type = #tpu.core_type<tc>, window_params = [{transform_indices = @transform_0, window_bounds = array<i64: 1, 16, 4>}, {pipeline_mode = #tpu.pipeline_mode<synchronous>, transform_indices = @transform_1, window_bounds = array<i64: 3, 4, 8>}, {pipeline_mode = #tpu.pipeline_mode<synchronous>, transform_indices = @transform_2, window_bounds = array<i64: 1, 8>}, {pipeline_mode = #tpu.pipeline_mode<synchronous>, transform_indices = @transform_3, window_bounds = array<i64: 5, 8, 16>}, {pipeline_mode = #tpu.pipeline_mode<synchronous>, transform_indices = @transform_4, window_bounds = array<i64: 1, 16>}, {pipeline_mode = #tpu.pipeline_mode<synchronous>, transform_indices = @transform_5, window_bounds = array<i64: 4, 16, 1024>}, {pipeline_mode = #tpu.pipeline_mode<synchronous>, transform_indices = @transform_6, window_bounds = array<i64: 1, 1024>}, {pipeline_mode = #tpu.pipeline_mode<synchronous>, transform_indices = @transform_7, window_bounds = array<i64: 1, 1024>}, {pipeline_mode = #tpu.pipeline_mode<synchronous>, transform_indices = @transform_8, window_bounds = array<i64: 1, 1>}, {transform_indices = @transform_9, window_bounds = array<i64: 1, 1, 1>}]} {
    %c0 = arith.constant 0 : index
    %c0_0 = arith.constant 0 : index
    %c0_1 = arith.constant 0 : index
    %0 = vector.load %arg1[%c0, %c0_0, %c0_1] : memref<1x16x4xf32, #tpu.memory_space<vmem>>, vector<1x16x4xf32>
    %1 = vector.shape_cast %0 : vector<1x16x4xf32> to vector<16x4xf32>
    %cst = arith.constant 0.000000e+00 : f32
    %2 = vector.broadcast %cst : f32 to vector<25x4xf32>
    %c0_2 = arith.constant 0 : index
    %c0_3 = arith.constant 0 : index
    %3 = vector.load %arg11[%c0_2, %c0_3] : memref<25x4xf32, #tpu.memory_space<vmem>>, vector<25x4xf32>
    tpu.vector_store %arg11[%c0_2, %c0_3], %2 {strides = array<i32>} : memref<25x4xf32, #tpu.memory_space<vmem>>, vector<25x4xf32>,
    %c8 = arith.constant 8 : index
    %c0_4 = arith.constant 0 : index
    %4 = vector.load %arg11[%c8, %c0_4] : memref<25x4xf32, #tpu.memory_space<vmem>>, vector<16x4xf32>
    tpu.vector_store %arg11[%c8, %c0_4], %1 {strides = array<i32>} : memref<25x4xf32, #tpu.memory_space<vmem>>, vector<16x4xf32>,
    %cst_5 = arith.constant 0.000000e+00 : f32
    %5 = vector.broadcast %cst_5 : f32 to vector<16x8xf32>
    %c7 = arith.constant 7 : index
    %c0_6 = arith.constant 0 : index
    %6 = vector.load %arg11[%c7, %c0_6] : memref<25x4xf32, #tpu.memory_space<vmem>>, vector<16x4xf32>
    %c0_7 = arith.constant 0 : index
    %c0_8 = arith.constant 0 : index
    %c0_9 = arith.constant 0 : index
    %7 = vector.load %arg2[%c0_7, %c0_8, %c0_9] : memref<3x4x8xf32, #tpu.memory_space<vmem>>, vector<1x4x8xf32>
    %8 = vector.shape_cast %7 : vector<1x4x8xf32> to vector<4x8xf32>
    %cst_10 = arith.constant dense<0.000000e+00> : vector<16x8xf32>
    %9 = tpu.matmul %6, %8, %cst_10 {dimension_numbers = #tpu.dot_dimension_numbers<[1], [0], [0], [1], [0, 0, 1, 1], [], []>} : vector<16x4xf32>, vector<4x8xf32>, vector<16x8xf32> -> vector<16x8xf32>
    %10 = arith.addf %5, %9 : vector<16x8xf32>
    %c8_11 = arith.constant 8 : index
    %c0_12 = arith.constant 0 : index
    %11 = vector.load %arg11[%c8_11, %c0_12] : memref<25x4xf32, #tpu.memory_space<vmem>>, vector<16x4xf32>
    %c1 = arith.constant 1 : index
    %c0_13 = arith.constant 0 : index
    %c0_14 = arith.constant 0 : index
    %12 = vector.load %arg2[%c1, %c0_13, %c0_14] : memref<3x4x8xf32, #tpu.memory_space<vmem>>, vector<1x4x8xf32>
    %13 = vector.shape_cast %12 : vector<1x4x8xf32> to vector<4x8xf32>
    %cst_15 = arith.constant dense<0.000000e+00> : vector<16x8xf32>
    %14 = tpu.matmul %11, %13, %cst_15 {dimension_numbers = #tpu.dot_dimension_numbers<[1], [0], [0], [1], [0, 0, 1, 1], [], []>} : vector<16x4xf32>, vector<4x8xf32>, vector<16x8xf32> -> vector<16x8xf32>
    %15 = arith.addf %10, %14 : vector<16x8xf32>
    %c9 = arith.constant 9 : index
    %c0_16 = arith.constant 0 : index
    %16 = vector.load %arg11[%c9, %c0_16] : memref<25x4xf32, #tpu.memory_space<vmem>>, vector<16x4xf32>
    %c2 = arith.constant 2 : index
    %c0_17 = arith.constant 0 : index
    %c0_18 = arith.constant 0 : index
    %17 = vector.load %arg2[%c2, %c0_17, %c0_18] : memref<3x4x8xf32, #tpu.memory_space<vmem>>, vector<1x4x8xf32>
    %18 = vector.shape_cast %17 : vector<1x4x8xf32> to vector<4x8xf32>
    %cst_19 = arith.constant dense<0.000000e+00> : vector<16x8xf32>
    %19 = tpu.matmul %16, %18, %cst_19 {dimension_numbers = #tpu.dot_dimension_numbers<[1], [0], [0], [1], [0, 0, 1, 1], [], []>} : vector<16x4xf32>, vector<4x8xf32>, vector<16x8xf32> -> vector<16x8xf32>
    %20 = arith.addf %15, %19 : vector<16x8xf32>
    %c0_20 = arith.constant 0 : index
    %c0_21 = arith.constant 0 : index
    %21 = vector.load %arg3[%c0_20, %c0_21] : memref<1x8xf32, #tpu.memory_space<vmem>>, vector<1x8xf32>
    %22 = vector.broadcast %21 : vector<1x8xf32> to vector<16x8xf32>
    %23 = arith.addf %20, %22 : vector<16x8xf32>
    %cst_22 = arith.constant 0.000000e+00 : f32
    %24 = vector.broadcast %cst_22 : f32 to vector<16x8xf32>
    %25 = arith.maximumf %23, %24 : vector<16x8xf32>
    %26 = tpu.iota {dimensions = array<i32: 1>} : vector<8x16xi32>
    %27 = tpu.iota {dimensions = array<i32: 0>} : vector<8x16xi32>
    %c2_i32 = arith.constant 2 : i32
    %28 = vector.broadcast %c2_i32 : i32 to vector<8x16xi32>
    %29 = arith.muli %28, %27 : vector<8x16xi32>
    %30 = arith.cmpi eq, %26, %29 : vector<8x16xi32>
    %cst_23 = arith.constant 1.000000e+00 : f32
    %cst_24 = arith.constant 0.000000e+00 : f32
    %31 = vector.broadcast %cst_23 : f32 to vector<8x16xf32>
    %32 = vector.broadcast %cst_24 : f32 to vector<8x16xf32>
    %33 = arith.select %30, %31, %32 : vector<8x16xi1>, vector<8x16xf32>
    %c2_i32_25 = arith.constant 2 : i32
    %34 = vector.broadcast %c2_i32_25 : i32 to vector<8x16xi32>
    %35 = arith.muli %34, %27 : vector<8x16xi32>
    %c1_i32 = arith.constant 1 : i32
    %36 = vector.broadcast %c1_i32 : i32 to vector<8x16xi32>
    %37 = arith.addi %35, %36 : vector<8x16xi32>
    %38 = arith.cmpi eq, %26, %37 : vector<8x16xi32>
    %cst_26 = arith.constant 1.000000e+00 : f32
    %cst_27 = arith.constant 0.000000e+00 : f32
    %39 = vector.broadcast %cst_26 : f32 to vector<8x16xf32>
    %40 = vector.broadcast %cst_27 : f32 to vector<8x16xf32>
    %41 = arith.select %38, %39, %40 : vector<8x16xi1>, vector<8x16xf32>
    %cst_28 = arith.constant dense<0.000000e+00> : vector<8x8xf32>
    %42 = tpu.matmul %33, %25, %cst_28 {dimension_numbers = #tpu.dot_dimension_numbers<[1], [0], [0], [1], [0, 0, 1, 1], [], []>} : vector<8x16xf32>, vector<16x8xf32>, vector<8x8xf32> -> vector<8x8xf32>
    %cst_29 = arith.constant dense<0.000000e+00> : vector<8x8xf32>
    %43 = tpu.matmul %41, %25, %cst_29 {dimension_numbers = #tpu.dot_dimension_numbers<[1], [0], [0], [1], [0, 0, 1, 1], [], []>} : vector<8x16xf32>, vector<16x8xf32>, vector<8x8xf32> -> vector<8x8xf32>
    %44 = arith.maximumf %42, %43 : vector<8x8xf32>
    %cst_30 = arith.constant 0.000000e+00 : f32
    %45 = vector.broadcast %cst_30 : f32 to vector<18x8xf32>
    %c0_31 = arith.constant 0 : index
    %c0_32 = arith.constant 0 : index
    %46 = vector.load %arg12[%c0_31, %c0_32] : memref<18x8xf32, #tpu.memory_space<vmem>>, vector<18x8xf32>
    tpu.vector_store %arg12[%c0_31, %c0_32], %45 {strides = array<i32>} : memref<18x8xf32, #tpu.memory_space<vmem>>, vector<18x8xf32>,
    %c8_33 = arith.constant 8 : index
    %c0_34 = arith.constant 0 : index
    %47 = vector.load %arg12[%c8_33, %c0_34] : memref<18x8xf32, #tpu.memory_space<vmem>>, vector<8x8xf32>
    tpu.vector_store %arg12[%c8_33, %c0_34], %44 {strides = array<i32>} : memref<18x8xf32, #tpu.memory_space<vmem>>, vector<8x8xf32>,
    %cst_35 = arith.constant 0.000000e+00 : f32
    %48 = vector.broadcast %cst_35 : f32 to vector<8x16xf32>
    %c6 = arith.constant 6 : index
    %c0_36 = arith.constant 0 : index
    %49 = vector.load %arg12[%c6, %c0_36] : memref<18x8xf32, #tpu.memory_space<vmem>>, vector<8x8xf32>
    %c0_37 = arith.constant 0 : index
    %c0_38 = arith.constant 0 : index
    %c0_39 = arith.constant 0 : index
    %50 = vector.load %arg4[%c0_37, %c0_38, %c0_39] : memref<5x8x16xf32, #tpu.memory_space<vmem>>, vector<1x8x16xf32>
    %51 = vector.shape_cast %50 : vector<1x8x16xf32> to vector<8x16xf32>
    %cst_40 = arith.constant dense<0.000000e+00> : vector<8x16xf32>
    %52 = tpu.matmul %49, %51, %cst_40 {dimension_numbers = #tpu.dot_dimension_numbers<[1], [0], [0], [1], [0, 0, 1, 1], [], []>} : vector<8x8xf32>, vector<8x16xf32>, vector<8x16xf32> -> vector<8x16xf32>
    %53 = arith.addf %48, %52 : vector<8x16xf32>
    %c7_41 = arith.constant 7 : index
    %c0_42 = arith.constant 0 : index
    %54 = vector.load %arg12[%c7_41, %c0_42] : memref<18x8xf32, #tpu.memory_space<vmem>>, vector<8x8xf32>
    %c1_43 = arith.constant 1 : index
    %c0_44 = arith.constant 0 : index
    %c0_45 = arith.constant 0 : index
    %55 = vector.load %arg4[%c1_43, %c0_44, %c0_45] : memref<5x8x16xf32, #tpu.memory_space<vmem>>, vector<1x8x16xf32>
    %56 = vector.shape_cast %55 : vector<1x8x16xf32> to vector<8x16xf32>
    %cst_46 = arith.constant dense<0.000000e+00> : vector<8x16xf32>
    %57 = tpu.matmul %54, %56, %cst_46 {dimension_numbers = #tpu.dot_dimension_numbers<[1], [0], [0], [1], [0, 0, 1, 1], [], []>} : vector<8x8xf32>, vector<8x16xf32>, vector<8x16xf32> -> vector<8x16xf32>
    %58 = arith.addf %53, %57 : vector<8x16xf32>
    %c8_47 = arith.constant 8 : index
    %c0_48 = arith.constant 0 : index
    %59 = vector.load %arg12[%c8_47, %c0_48] : memref<18x8xf32, #tpu.memory_space<vmem>>, vector<8x8xf32>
    %c2_49 = arith.constant 2 : index
    %c0_50 = arith.constant 0 : index
    %c0_51 = arith.constant 0 : index
    %60 = vector.load %arg4[%c2_49, %c0_50, %c0_51] : memref<5x8x16xf32, #tpu.memory_space<vmem>>, vector<1x8x16xf32>
    %61 = vector.shape_cast %60 : vector<1x8x16xf32> to vector<8x16xf32>
    %cst_52 = arith.constant dense<0.000000e+00> : vector<8x16xf32>
    %62 = tpu.matmul %59, %61, %cst_52 {dimension_numbers = #tpu.dot_dimension_numbers<[1], [0], [0], [1], [0, 0, 1, 1], [], []>} : vector<8x8xf32>, vector<8x16xf32>, vector<8x16xf32> -> vector<8x16xf32>
    %63 = arith.addf %58, %62 : vector<8x16xf32>
    %c9_53 = arith.constant 9 : index
    %c0_54 = arith.constant 0 : index
    %64 = vector.load %arg12[%c9_53, %c0_54] : memref<18x8xf32, #tpu.memory_space<vmem>>, vector<8x8xf32>
    %c3 = arith.constant 3 : index
    %c0_55 = arith.constant 0 : index
    %c0_56 = arith.constant 0 : index
    %65 = vector.load %arg4[%c3, %c0_55, %c0_56] : memref<5x8x16xf32, #tpu.memory_space<vmem>>, vector<1x8x16xf32>
    %66 = vector.shape_cast %65 : vector<1x8x16xf32> to vector<8x16xf32>
    %cst_57 = arith.constant dense<0.000000e+00> : vector<8x16xf32>
    %67 = tpu.matmul %64, %66, %cst_57 {dimension_numbers = #tpu.dot_dimension_numbers<[1], [0], [0], [1], [0, 0, 1, 1], [], []>} : vector<8x8xf32>, vector<8x16xf32>, vector<8x16xf32> -> vector<8x16xf32>
    %68 = arith.addf %63, %67 : vector<8x16xf32>
    %c10 = arith.constant 10 : index
    %c0_58 = arith.constant 0 : index
    %69 = vector.load %arg12[%c10, %c0_58] : memref<18x8xf32, #tpu.memory_space<vmem>>, vector<8x8xf32>
    %c4 = arith.constant 4 : index
    %c0_59 = arith.constant 0 : index
    %c0_60 = arith.constant 0 : index
    %70 = vector.load %arg4[%c4, %c0_59, %c0_60] : memref<5x8x16xf32, #tpu.memory_space<vmem>>, vector<1x8x16xf32>
    %71 = vector.shape_cast %70 : vector<1x8x16xf32> to vector<8x16xf32>
    %cst_61 = arith.constant dense<0.000000e+00> : vector<8x16xf32>
    %72 = tpu.matmul %69, %71, %cst_61 {dimension_numbers = #tpu.dot_dimension_numbers<[1], [0], [0], [1], [0, 0, 1, 1], [], []>} : vector<8x8xf32>, vector<8x16xf32>, vector<8x16xf32> -> vector<8x16xf32>
    %73 = arith.addf %68, %72 : vector<8x16xf32>
    %c0_62 = arith.constant 0 : index
    %c0_63 = arith.constant 0 : index
    %74 = vector.load %arg5[%c0_62, %c0_63] : memref<1x16xf32, #tpu.memory_space<vmem>>, vector<1x16xf32>
    %75 = vector.broadcast %74 : vector<1x16xf32> to vector<8x16xf32>
    %76 = arith.addf %73, %75 : vector<8x16xf32>
    %cst_64 = arith.constant 0.000000e+00 : f32
    %77 = vector.broadcast %cst_64 : f32 to vector<8x16xf32>
    %78 = arith.maximumf %76, %77 : vector<8x16xf32>
    %79 = tpu.iota {dimensions = array<i32: 1>} : vector<4x8xi32>
    %80 = tpu.iota {dimensions = array<i32: 0>} : vector<4x8xi32>
    %c2_i32_65 = arith.constant 2 : i32
    %81 = vector.broadcast %c2_i32_65 : i32 to vector<4x8xi32>
    %82 = arith.muli %81, %80 : vector<4x8xi32>
    %83 = arith.cmpi eq, %79, %82 : vector<4x8xi32>
    %cst_66 = arith.constant 1.000000e+00 : f32
    %cst_67 = arith.constant 0.000000e+00 : f32
    %84 = vector.broadcast %cst_66 : f32 to vector<4x8xf32>
    %85 = vector.broadcast %cst_67 : f32 to vector<4x8xf32>
    %86 = arith.select %83, %84, %85 : vector<4x8xi1>, vector<4x8xf32>
    %c2_i32_68 = arith.constant 2 : i32
    %87 = vector.broadcast %c2_i32_68 : i32 to vector<4x8xi32>
    %88 = arith.muli %87, %80 : vector<4x8xi32>
    %c1_i32_69 = arith.constant 1 : i32
    %89 = vector.broadcast %c1_i32_69 : i32 to vector<4x8xi32>
    %90 = arith.addi %88, %89 : vector<4x8xi32>
    %91 = arith.cmpi eq, %79, %90 : vector<4x8xi32>
    %cst_70 = arith.constant 1.000000e+00 : f32
    %cst_71 = arith.constant 0.000000e+00 : f32
    %92 = vector.broadcast %cst_70 : f32 to vector<4x8xf32>
    %93 = vector.broadcast %cst_71 : f32 to vector<4x8xf32>
    %94 = arith.select %91, %92, %93 : vector<4x8xi1>, vector<4x8xf32>
    %cst_72 = arith.constant dense<0.000000e+00> : vector<4x16xf32>
    %95 = tpu.matmul %86, %78, %cst_72 {dimension_numbers = #tpu.dot_dimension_numbers<[1], [0], [0], [1], [0, 0, 1, 1], [], []>} : vector<4x8xf32>, vector<8x16xf32>, vector<4x16xf32> -> vector<4x16xf32>
    %cst_73 = arith.constant dense<0.000000e+00> : vector<4x16xf32>
    %96 = tpu.matmul %94, %78, %cst_73 {dimension_numbers = #tpu.dot_dimension_numbers<[1], [0], [0], [1], [0, 0, 1, 1], [], []>} : vector<4x8xf32>, vector<8x16xf32>, vector<4x16xf32> -> vector<4x16xf32>
    %97 = arith.maximumf %95, %96 : vector<4x16xf32>
    %cst_74 = arith.constant 0.000000e+00 : f32
    %98 = vector.broadcast %cst_74 : f32 to vector<1x1024xf32>
    %99 = vector.extract_strided_slice %97 {offsets = [0, 0], sizes = [1, 16], strides = [1, 1]} : vector<4x16xf32> to vector<1x16xf32>
    %c0_75 = arith.constant 0 : index
    %c0_76 = arith.constant 0 : index
    %c0_77 = arith.constant 0 : index
    %100 = vector.load %arg6[%c0_75, %c0_76, %c0_77] : memref<4x16x1024xf32, #tpu.memory_space<vmem>>, vector<1x16x1024xf32>
    %101 = vector.shape_cast %100 : vector<1x16x1024xf32> to vector<16x1024xf32>
    %cst_78 = arith.constant dense<0.000000e+00> : vector<1x1024xf32>
    %102 = tpu.matmul %99, %101, %cst_78 {dimension_numbers = #tpu.dot_dimension_numbers<[1], [0], [0], [1], [0, 0, 1, 1], [], []>} : vector<1x16xf32>, vector<16x1024xf32>, vector<1x1024xf32> -> vector<1x1024xf32>
    %103 = arith.addf %98, %102 : vector<1x1024xf32>
    %104 = vector.extract_strided_slice %97 {offsets = [1, 0], sizes = [1, 16], strides = [1, 1]} : vector<4x16xf32> to vector<1x16xf32>
    %c1_79 = arith.constant 1 : index
    %c0_80 = arith.constant 0 : index
    %c0_81 = arith.constant 0 : index
    %105 = vector.load %arg6[%c1_79, %c0_80, %c0_81] : memref<4x16x1024xf32, #tpu.memory_space<vmem>>, vector<1x16x1024xf32>
    %106 = vector.shape_cast %105 : vector<1x16x1024xf32> to vector<16x1024xf32>
    %cst_82 = arith.constant dense<0.000000e+00> : vector<1x1024xf32>
    %107 = tpu.matmul %104, %106, %cst_82 {dimension_numbers = #tpu.dot_dimension_numbers<[1], [0], [0], [1], [0, 0, 1, 1], [], []>} : vector<1x16xf32>, vector<16x1024xf32>, vector<1x1024xf32> -> vector<1x1024xf32>
    %108 = arith.addf %103, %107 : vector<1x1024xf32>
    %109 = vector.extract_strided_slice %97 {offsets = [2, 0], sizes = [1, 16], strides = [1, 1]} : vector<4x16xf32> to vector<1x16xf32>
    %c2_83 = arith.constant 2 : index
    %c0_84 = arith.constant 0 : index
    %c0_85 = arith.constant 0 : index
    %110 = vector.load %arg6[%c2_83, %c0_84, %c0_85] : memref<4x16x1024xf32, #tpu.memory_space<vmem>>, vector<1x16x1024xf32>
    %111 = vector.shape_cast %110 : vector<1x16x1024xf32> to vector<16x1024xf32>
    %cst_86 = arith.constant dense<0.000000e+00> : vector<1x1024xf32>
    %112 = tpu.matmul %109, %111, %cst_86 {dimension_numbers = #tpu.dot_dimension_numbers<[1], [0], [0], [1], [0, 0, 1, 1], [], []>} : vector<1x16xf32>, vector<16x1024xf32>, vector<1x1024xf32> -> vector<1x1024xf32>
    %113 = arith.addf %108, %112 : vector<1x1024xf32>
    %114 = vector.extract_strided_slice %97 {offsets = [3, 0], sizes = [1, 16], strides = [1, 1]} : vector<4x16xf32> to vector<1x16xf32>
    %c3_87 = arith.constant 3 : index
    %c0_88 = arith.constant 0 : index
    %c0_89 = arith.constant 0 : index
    %115 = vector.load %arg6[%c3_87, %c0_88, %c0_89] : memref<4x16x1024xf32, #tpu.memory_space<vmem>>, vector<1x16x1024xf32>
    %116 = vector.shape_cast %115 : vector<1x16x1024xf32> to vector<16x1024xf32>
    %cst_90 = arith.constant dense<0.000000e+00> : vector<1x1024xf32>
    %117 = tpu.matmul %114, %116, %cst_90 {dimension_numbers = #tpu.dot_dimension_numbers<[1], [0], [0], [1], [0, 0, 1, 1], [], []>} : vector<1x16xf32>, vector<16x1024xf32>, vector<1x1024xf32> -> vector<1x1024xf32>
    %118 = arith.addf %113, %117 : vector<1x1024xf32>
    %c0_91 = arith.constant 0 : index
    %c0_92 = arith.constant 0 : index
    %119 = vector.load %arg7[%c0_91, %c0_92] : memref<1x1024xf32, #tpu.memory_space<vmem>>, vector<1x1024xf32>
    %120 = arith.addf %118, %119 : vector<1x1024xf32>
    %cst_93 = arith.constant 0.000000e+00 : f32
    %121 = vector.broadcast %cst_93 : f32 to vector<1x1024xf32>
    %122 = arith.maximumf %120, %121 : vector<1x1024xf32>
    %c0_94 = arith.constant 0 : index
    %c0_95 = arith.constant 0 : index
    %123 = vector.load %arg8[%c0_94, %c0_95] : memref<1x1024xf32, #tpu.memory_space<vmem>>, vector<1x1024xf32>
    %124 = arith.mulf %122, %123 : vector<1x1024xf32>
    %cst_96 = arith.constant dense<0.000000e+00> : vector<1xf32>
    %125 = vector.multi_reduction <add>, %124, %cst_96 [1] : vector<1x1024xf32> to vector<1xf32>
    %126 = vector.shape_cast %125 : vector<1xf32> to vector<1x1xf32>
    %c0_97 = arith.constant 0 : index
    %c0_98 = arith.constant 0 : index
    %127 = vector.load %arg9[%c0_97, %c0_98] : memref<1x1xf32, #tpu.memory_space<vmem>>, vector<1x1xf32>
    %128 = arith.addf %126, %127 : vector<1x1xf32>
    %c0_99 = arith.constant 0 : index
    %c0_100 = arith.constant 0 : index
    %c0_101 = arith.constant 0 : index
    %129 = vector.load %arg10[%c0_99, %c0_100, %c0_101] : memref<1x1x1xf32, #tpu.memory_space<vmem>>, vector<1x1x1xf32>
    %130 = vector.shape_cast %129 : vector<1x1x1xf32> to vector<1x1xf32>
    %131 = vector.shape_cast %128 : vector<1x1xf32> to vector<1x1x1xf32>
    tpu.vector_store %arg10[%c0_99, %c0_100, %c0_101], %131 {strides = array<i32>} : memref<1x1x1xf32, #tpu.memory_space<vmem>>, vector<1x1x1xf32>,
    return
  }
  func.func @transform_0(%arg0: i32) -> (i32, i32, i32) {
    %c0_i32 = arith.constant 0 : i32
    %c0_i32_0 = arith.constant 0 : i32
    %c0_i32_1 = arith.constant 0 : i32
    return %arg0, %c0_i32, %c0_i32_0 : i32, i32, i32
  }
  func.func @transform_1(%arg0: i32) -> (i32, i32, i32) {
    %c0_i32 = arith.constant 0 : i32
    %c0_i32_0 = arith.constant 0 : i32
    %c0_i32_1 = arith.constant 0 : i32
    %c0_i32_2 = arith.constant 0 : i32
    return %c0_i32, %c0_i32_0, %c0_i32_1 : i32, i32, i32
  }
  func.func @transform_2(%arg0: i32) -> (i32, i32) {
    %c0_i32 = arith.constant 0 : i32
    %c0_i32_0 = arith.constant 0 : i32
    %c0_i32_1 = arith.constant 0 : i32
    return %c0_i32, %c0_i32_0 : i32, i32
  }
  func.func @transform_3(%arg0: i32) -> (i32, i32, i32) {
    %c0_i32 = arith.constant 0 : i32
    %c0_i32_0 = arith.constant 0 : i32
    %c0_i32_1 = arith.constant 0 : i32
    %c0_i32_2 = arith.constant 0 : i32
    return %c0_i32, %c0_i32_0, %c0_i32_1 : i32, i32, i32
  }
  func.func @transform_4(%arg0: i32) -> (i32, i32) {
    %c0_i32 = arith.constant 0 : i32
    %c0_i32_0 = arith.constant 0 : i32
    %c0_i32_1 = arith.constant 0 : i32
    return %c0_i32, %c0_i32_0 : i32, i32
  }
  func.func @transform_5(%arg0: i32) -> (i32, i32, i32) {
    %c0_i32 = arith.constant 0 : i32
    %c0_i32_0 = arith.constant 0 : i32
    %c0_i32_1 = arith.constant 0 : i32
    %c0_i32_2 = arith.constant 0 : i32
    return %c0_i32, %c0_i32_0, %c0_i32_1 : i32, i32, i32
  }
  func.func @transform_6(%arg0: i32) -> (i32, i32) {
    %c0_i32 = arith.constant 0 : i32
    %c0_i32_0 = arith.constant 0 : i32
    %c0_i32_1 = arith.constant 0 : i32
    return %c0_i32, %c0_i32_0 : i32, i32
  }
  func.func @transform_7(%arg0: i32) -> (i32, i32) {
    %c0_i32 = arith.constant 0 : i32
    %c0_i32_0 = arith.constant 0 : i32
    %c0_i32_1 = arith.constant 0 : i32
    return %c0_i32, %c0_i32_0 : i32, i32
  }
  func.func @transform_8(%arg0: i32) -> (i32, i32) {
    %c0_i32 = arith.constant 0 : i32
    %c0_i32_0 = arith.constant 0 : i32
    %c0_i32_1 = arith.constant 0 : i32
    return %c0_i32, %c0_i32_0 : i32, i32
  }
  func.func @transform_9(%arg0: i32) -> (i32, i32, i32) {
    %c0_i32 = arith.constant 0 : i32
    %c0_i32_0 = arith.constant 0 : i32
    %c0_i32_1 = arith.constant 0 : i32
    return %arg0, %c0_i32, %c0_i32_0 : i32, i32, i32
  }
}

</mosaic_0001>

<bundles_post_ra>
// kernel: tpu_custom_call.1
= control target key start
LH: loop header
LB: loop body
LE: loop exit
PB: predicated region body
PF: predicated region fallthrough
CT: control target
= control target key end

     0   :  { %s3499_s0 = inlined_call_operand.vmem [shape: f32[2,16,4], index: 0, kind: input, shape index: {}]   ;;  %s3500_s1 = inlined_call_operand.hbm [shape: f32[3,4,8], index: 1, kind: input, shape index: {}]   ;;  %s3501_s2 = inlined_call_operand.vmem [shape: f32[1,8], index: 2, kind: input, shape index: {}]   ;;  %s3502_s3 = inlined_call_operand.vmem [shape: f32[5,8,16], index: 3, kind: input, shape index: {}]   ;;  %s3503_s4 = inlined_call_operand.hbm [shape: f32[1,16], index: 4, kind: input, shape index: {}]   ;;  %s3504_s5 = inlined_call_operand.hbm [shape: f32[4,16,1024], index: 5, kind: input, shape index: {}]   ;;  %s3505_s6 = inlined_call_operand.vmem [shape: f32[1,1024], index: 6, kind: input, shape index: {}]   ;;  %s3506_s7 = inlined_call_operand.hbm [shape: f32[1,1024], index: 7, kind: input, shape index: {}]   ;;  %s3507_s8 = inlined_call_operand.<no memory space> [shape: f32[1,1], index: 8, kind: input, shape index: {}]   ;;  %s3508_s9 = inlined_call_operand.vmem [shape: f32[2,1,1], index: 9, kind: output, shape index: {}]  }
   0x1   :  { %v14_v0 = vstv %s3507_s8 }
   0x2   :  { %15 = vst [vmem:[#allocation4] sm:$0x1] %v14_v0 }
   0x3   :  { %16 = vsyncpa [#allocation6], 0 }
   0x4   :  { %17 = vsyncpa [#allocation8], 0 }
   0x5   :  { %18 = vsyncpa [#allocation11], 0  ;;  %s3213_s11 = smov 0  }
   0x6 LB: > { %s3151_s12 = smov [#allocation7]   ;;  %s3219_s14 = sadd.s32 4294967295, %s3149_s11   ;;  %s3149_s11 = sphi %s3213_s11, %s24_s11  }
   0x7   : > { %s281_s13 = sshll.u32 %s3151_s12, 4  ;;  %p2824_p0 = scmp.ge.s32.totalorder %s3149_s11, 1  ;;  %s282_s13 = int_to_ptr.vmem [resolvable:$true] %s281_s13 }
   0x8   : > { %p249_p1 = scmp.lt.s32.totalorder %s3149_s11, 3  ;;  %p3002_p2 = scmp.eq.s32.totalorder %s3219_s14, 0 }
   0x9   : > { %s3152_s15 = smov [#allocation5]   ;;  %s3153_s18 = smov [#allocation9]  }
   0xa   : > { %p3224_p3 = pnand %p2824_p0, %p249_p1  ;;  %s261_s16 = sshll.u32 %s3152_s15, 4  ;;  %s3230_s16 = int_to_ptr.vmem [resolvable:$true] %s261_s16 }
   0xb   : > { %s291_s19 = sshll.u32 %s3153_s18, 4  ;;  %s3038_s20 = scalar_lea.vmem %s282_s13, 16  ;;  %s3238_s19 = int_to_ptr.vmem [resolvable:$true] %s291_s19 }
   0xc   : > { %p2989_p4 = pneg %p3224_p3  ;;  %p3039_p7 = scmp.ne.s32.totalorder %s282_s13, %s3038_s20 }
   0xd   : > { %s3045_s21 = scalar_lea.vmem %s282_s13, 32  ;;  %p3046_p10 = scmp.lt.s32.totalorder %s282_s13, %s282_s13 }
   0xe   : > { %p3234_p5 = pnand %p3002_p2, %p2989_p4  ;;  %p3047_p11 = scmp.lt.s32.totalorder %s3045_s21, %s3038_s20 }
  0x10   : > { %p3029_p6 = pneg %p3234_p5  ;;  %p3048_p12 = por %p3047_p11, %p3046_p10 }
  0x12   : > { %p3041_p8 = pnand %p3039_p7, %p3029_p6 }
  0x14   : > { %p3042_p9 = pneg %p3041_p8 }
  0x16   : > { %p3049_p13 = pnand %p3048_p12, %p3042_p9 }
  0x18   : > { %3052 = shalt.err (!%p3049_p13)
}
  0x19   : > { %2995 = dma.hbm_to_vmem [thread:$0]  (!%p3234_p5), %s3503_s4, 16, %s282_s13, [#allocation8]  }
  0x1a   : > { %s3064_s24 = scalar_lea.vmem %s3230_s16, 192  ;;  %p3072_p7 = scmp.lt.s32.totalorder %s3230_s16, %s3230_s16 }
  0x1b   : > { %p3065_p0 = scmp.ne.s32.totalorder %s3230_s16, %s3064_s24  ;;  %p3073_p8 = scmp.lt.s32.totalorder %s3064_s24, %s3064_s24 }
  0x1d   : > { %p3067_p1 = pnand %p3065_p0, %p3029_p6  ;;  %p3074_p9 = por %p3073_p8, %p3072_p7 }
  0x1f   : > { %p3068_p4 = pneg %p3067_p1 }
  0x21   : > { %p3075_p10 = pnand %p3074_p9, %p3068_p4 }
  0x23   : > { %3078 = shalt.err (!%p3075_p10)
}
  0x24   : > { %s3154_s25 = smov 64   ;;  %s3155_s26 = smov 4  }
  0x25   : > { %2992 = dma.hbm_to_vmem [thread:$0]  (!%p3234_p5), %s3500_s1, 192, %s3230_s16, [#allocation6], %s3154_s25, %s3154_s25, %s3155_s26  }
  0x26   : > { %s3090_s29 = scalar_lea.vmem %s3238_s19, 8192  ;;  %p3098_p0 = scmp.lt.s32.totalorder %s3238_s19, %s3238_s19 }
  0x27   : > { %p3091_p11 = scmp.ne.s32.totalorder %s3238_s19, %s3090_s29  ;;  %p3099_p1 = scmp.lt.s32.totalorder %s3090_s29, %s3090_s29 }
  0x29   : > { %p3093_p12 = pnand %p3091_p11, %p3029_p6  ;;  %p3100_p4 = por %p3099_p1, %p3098_p0 }
  0x2b   : > { %p3094_p13 = pneg %p3093_p12 }
  0x2d   : > { %p3101_p7 = pnand %p3100_p4, %p3094_p13 }
  0x2f   : > { %3104 = shalt.err (!%p3101_p7)
}
  0x30   : > { %s3156_s30 = smov 1024   ;;  %s3157_s13 = smov [#allocation10]  }
  0x31   : > { %2998 = dma.hbm_to_vmem [thread:$0]  (!%p3234_p5), %s3504_s5, 8192, %s3238_s19, [#allocation8], %s3156_s30, %s3156_s30, %s3154_s25  }
  0x32   : > { %s308_s15 = sshll.u32 %s3157_s13, 4  ;;  %s309_s15 = int_to_ptr.vmem [resolvable:$true] %s308_s15 }
  0x33   : > { %s3116_s16 = scalar_lea.vmem %s309_s15, 128  ;;  %p3124_p11 = scmp.lt.s32.totalorder %s309_s15, %s309_s15 }
  0x34   : > { %p3117_p8 = scmp.ne.s32.totalorder %s309_s15, %s3116_s16  ;;  %p3125_p12 = scmp.lt.s32.totalorder %s3116_s16, %s3116_s16 }
  0x36   : > { %p3119_p9 = pnand %p3117_p8, %p3029_p6  ;;  %p3126_p13 = por %p3125_p12, %p3124_p11 }
  0x38   : > { %p3120_p10 = pneg %p3119_p9 }
  0x3a   : > { %p3127_p0 = pnand %p3126_p13, %p3120_p10 }
  0x3c   : > { %3130 = shalt.err (!%p3127_p0)
}
  0x3d   : > { %3001 = dma.hbm_to_vmem [thread:$0]  (!%p3234_p5), %s3506_s7, 128, %s309_s15, [#allocation11]  }
  0x3e   : > { %332 = sbr.rel (%p3224_p3) target bundleno = 1295 (0x50f), region = 56 }
  0x43   : > { %3136 = dma.done.wait (%p3002_p2), [#allocation6], 192  }
  0x44   : > { %3138 = vsyncadd (%p3002_p2), [#allocation6], 4294967104 }
  0x45   : > { %3140 = dma.done.wait (%p3002_p2), [#allocation8], 8208  }
  0x46   : > { %3142 = vsyncadd (%p3002_p2), [#allocation8], 4294959088 }
  0x47   : > { %3144 = dma.done.wait (%p3002_p2), [#allocation11], 128  }
  0x48   : > { %3146 = vsyncadd (%p3002_p2), [#allocation11], 4294967168  ;;  %p378_p3 = scmp.lt.s32.totalorder %s3219_s14, 1  ;;  %vm388_vm0 = vcmask 31744   ;;  %v3158_v1 = vmov 0.0   ;;  %vm392_vm1 = vcmask 24576   ;;  %v673_v13 = vlaneseq }
  0x49   : > { %390 = vst.msk [vmem:[#allocation2 + $0x8] sm:$0xff] %vm388_vm0, %v3158_v1  ;;  %389 = vst.msk [vmem:[#allocation2] sm:$0xff] %vm388_vm0, %v3158_v1  ;;  %vm409_vm2 = vcmask 1043456   ;;  %v402_v2 = vld [vmem:[#allocation5 + $0x4] sm:$0xf]  ;;  %vm3159_vm3 = vmmov 0  }
  0x4a   : > { %391 = vst.msk [vmem:[#allocation2 + $0x10] sm:$0xff] %vm388_vm0, %v3158_v1  ;;  %s3512_s14 = smov (!%p378_p3, %s3219_s14), 1  ;;  %v398_v3 = vld [vmem:[#allocation5] sm:$0xf]  ;;  %2909 = vmatprep.subr.msk.mxu0 %vm409_vm2, %v402_v2  ;;  %v575_v6 = vld [vmem:[#allocation5 + $0x8] sm:$0xf] }
  0x4b   : > { %393 = vst.msk [vmem:[#allocation2 + $0x18] sm:$0x1] %vm392_vm1, %v3158_v1  ;;  %s2879_s8 = sshll.u32 %s3512_s14, 4  ;;  %2914 = vmatprep.subr.msk.mxu1 %vm409_vm2, %v398_v3  ;;  %2910 = vmatpush3.msk.msra.mxu0 %vm409_vm2, %v402_v2  ;;  %v3333_v14 = vshrl.u32 %v673_v13, 7  ;;  %v2846_v22 = vld [vmem:[%s3501_s2] ss:$0 sm:$0xff] }
  0x4c   : > { %s382_s21 = scalar_lea.vmem %s3499_s0, %s2879_s8  ;;  %2915 = vmatpush3.msk.msra.mxu1 %vm409_vm2, %v398_v3  ;;  %2919 = vmatprep.subr.msk.mxu0 %vm409_vm2, %v575_v6  ;;  %v674_v23 = vand.u32 127, %v673_v13  ;;  %vm683_vm6 = vcmask 130048   ;;  %vm831_vm7 = vcmask 64512   ;;  %vm834_vm8 = vcmask 58368   ;;  %v2849_v35 = vld [vmem:[%s3502_s3 + $0x8] sm:$0xff]  ;;  %v838_v36 = vld [vmem:[%s3502_s3] sm:$0xff]  ;;  %s385_s8 = scalar_lea.vmem %s3508_s9, %s3512_s14 }
  0x4d   : > { %v386_v4 = vld [vmem:[%s382_s21] sm:$0xff]  ;;  %v387_v5 = vld [vmem:[%s382_s21 + $0x8] sm:$0xff]  ;;  %2924 = vmatprep.subr.mxu1 %v3158_v1  ;;  %v677_v17 = vmul.u32 2, %v3333_v14  ;;  %833 = vst.msk [vmem:[#allocation3 + $0x8] sm:$0xff] %vm831_vm7, %v3158_v1  ;;  %832 = vst.msk [vmem:[#allocation3] sm:$0xff] %vm831_vm7, %v3158_v1  ;;  %vm2712_vm9 = vcmask 1040384  }
  0x4e   : > { %394 = vst.msk [vmem:[#allocation2 + $0x8] sm:$0xff] %vm388_vm0, %v386_v4  ;;  %395 = vst.msk [vmem:[#allocation2 + $0x10] sm:$0xff] %vm388_vm0, %v387_v5  ;;  %v2852_v42 = vld [vmem:[%s3502_s3 + $0x10] sm:$0xff]  ;;  %v2854_v45 = vld [vmem:[%s3502_s3 + $0x18] sm:$0xff]  ;;  %vm2732_vm10 = vcmask 0  }
  0x4f   : > { %v680_v24 = vadd.s32 1, %v677_v17  ;;  %vm678_vm4 = vcmp.eq.s32.totalorder %v674_v23, %v677_v17  ;;  %835 = vst.msk [vmem:[#allocation3 + $0x10] sm:$0x3] %vm834_vm8, %v3158_v1  ;;  %v2856_v46 = vld [vmem:[%s3502_s3 + $0x20] sm:$0xff]  ;;  %v1399_v4 = vld [vmem:[#allocation9 + $0xc8] sm:$0xff] }
  0x50   : > { %v3340_v33 = vsel %vm678_vm4, 1.0, %v3158_v1  ;;  %v2858_v62 = vld [vmem:[#allocation7] ss:$0 sm:$0xff] }
  0x51   : > { %vm681_vm5 = vcmp.eq.s32.totalorder %v674_v23, %v680_v24  ;;  %v1401_v5 = vld [vmem:[#allocation9 + $0xd8] sm:$0xff]  ;;  %v1395_v23 = vld [vmem:[#allocation9 + $0xa8] sm:$0xff] }
  0x52   : > { %v3343_v34 = vsel %vm681_vm5, 1.0, %v3158_v1  ;;  %v1405_v13 = vld [vmem:[#allocation9 + $0xf8] sm:$0xff] }
  0x53   : > { %v1397_v24 = vld [vmem:[#allocation9 + $0xb8] sm:$0xff] }
  0x55   : > { %v399_v7 = vld [vmem:[#allocation2 + $0x8] sm:$0xff]  ;;  %v400_v9 = vld [vmem:[#allocation2 + $0x10] sm:$0xff] }
  0x56   : > { %v396_v8 = vld [vmem:[#allocation2 + $0x7] sm:$0xff]  ;;  %2911 = vmatprep.mubr.msk.f32.mxu0 %vm388_vm0, %v399_v7  ;;  %v397_v10 = vld [vmem:[#allocation2 + $0xf] sm:$0xff]  ;;  %v1400_v7 = vld [vmem:[#allocation9 + $0xd0] sm:$0xff] }
  0x57   : > { %2916 = vmatprep.mubr.msk.f32.mxu1 %vm388_vm0, %v396_v8  ;;  %v572_v11 = vld [vmem:[#allocation2 + $0x9] sm:$0xff]  ;;  %2912 = vmatmul.mubr.msk.f32.vlgmr.msra.gmra.mxu0 %vm388_vm0, %v400_v9  ;;  %v573_v12 = vld [vmem:[#allocation2 + $0x11] sm:$0xff]  ;;  %v1393_v9 = vld [vmem:[#allocation9 + $0x98] sm:$0xff] }
  0x58   : > { %2917 = vmatmul.mubr.msk.f32.vlgmr.msra.gmra.mxu1 %vm388_vm0, %v397_v10  ;;  %2920 = vmatpush3.msk.msra.mxu0 %vm409_vm2, %v575_v6  ;;  %v1398_v6 = vld [vmem:[#allocation9 + $0xc0] sm:$0xff]  ;;  %v1391_v8 = vld [vmem:[#allocation9 + $0x88] sm:$0xff] }
  0x59   : > { %2921 = vmatprep.mubr.msk.f32.mxu0 %vm388_vm0, %v572_v11  ;;  %2931 = vmatprep.subr.mxu0 %v3158_v1  ;;  %v1390_v10 = vld [vmem:[#allocation9 + $0x80] sm:$0xff]  ;;  %v1392_v11 = vld [vmem:[#allocation9 + $0x90] sm:$0xff] }
  0x5a   : > { %2928 = vmatprep.mubr.msk.f32.mxu1 %vm3159_vm3, %v3158_v1 }
  0x5b   : > { %2922 = vmatmul.mubr.msk.f32.vlgmr.msra.gmra.mxu0 %vm388_vm0, %v573_v12  ;;  %v1403_v12 = vld [vmem:[#allocation9 + $0xe8] sm:$0xff] }
  0x5c   : > { %2935 = vmatprep.mubr.msk.f32.mxu0 %vm3159_vm3, %v3158_v1 }
 0x117   : > { %v2913_v15 = vpop.f32.mrf.mxu0 }
 0x118   : > { %v2918_v16 = vpop.f32.mrf.mxu1 }
 0x119   : > { %v479_v18 = vpop.f32.mrf.mxu0  ;;  %v569_v20 = vadd.f32 %v2918_v16, %v2913_v15 }
 0x11a   : > { %v563_v19 = vpop.f32.mrf.mxu1 }
 0x11b   : > { %v2923_v21 = vpop.f32.mrf.mxu0  ;;  %v564_v25 = vadd.f32 %v563_v19, %v479_v18 }
 0x11c   : > { %v661_v26 = vadd.f32 %v2923_v21, %v569_v20  ;;  %v1402_v21 = vld [vmem:[#allocation9 + $0xe0] sm:$0xff] }
 0x11d   : > { %v651_v27 = vpop.f32.mrf.mxu0 }
 0x11e   : > { %v670_v28 = vadd.f32 %v2846_v22, %v661_v26  ;;  %v660_v29 = vadd.f32 %v651_v27, %v564_v25  ;;  %v1394_v25 = vld [vmem:[#allocation9 + $0xa0] sm:$0xff]  ;;  %v1396_v26 = vld [vmem:[#allocation9 + $0xb0] sm:$0xff]  ;;  %v1382_v27 = vld [vmem:[#allocation9 + $0x48] sm:$0xff] }
 0x120   : > { %v672_v30 = vmax.f32 %v670_v28, 0.0  ;;  %v669_v31 = vadd.f32 %v2846_v22, %v660_v29  ;;  %v1404_v22 = vld [vmem:[#allocation9 + $0xf0] sm:$0xff]  ;;  %v1384_v28 = vld [vmem:[#allocation9 + $0x58] sm:$0xff]  ;;  %v1381_v29 = vld [vmem:[#allocation9 + $0x40] sm:$0xff] }
 0x122   : > { %v671_v32 = vmax.f32 %v669_v31, 0.0  ;;  %2925 = vmatpush3.msra.mxu1 %v672_v30  ;;  %2932 = vmatpush3.msra.mxu0 %v672_v30  ;;  %v1383_v30 = vld [vmem:[#allocation9 + $0x50] sm:$0xff]  ;;  %v1374_v31 = vld [vmem:[#allocation9 + $0x8] sm:$0xff] }
 0x123   : > { %2926 = vmatprep.subr.mxu1 %v3158_v1  ;;  %2933 = vmatprep.subr.mxu0 %v3158_v1 }
 0x124   : > { %2927 = vmatpush3.msra.mxu1 %v671_v32  ;;  %2934 = vmatpush3.msra.mxu0 %v671_v32  ;;  %v1376_v32 = vld [vmem:[#allocation9 + $0x18] sm:$0xff] }
 0x125   : > { %2929 = vmatmul.mubr.msk.f32.vlgmr.msra.gmra.mxu1 %vm683_vm6, %v3340_v33  ;;  %2936 = vmatmul.mubr.msk.f32.vlgmr.msra.gmra.mxu0 %vm683_vm6, %v3343_v34 }
 0x126   : > { %2938 = vmatprep.subr.mxu1 %v3158_v1  ;;  %2943 = vmatprep.subr.mxu0 %v3158_v1 }
 0x127   : > { %2940 = vmatprep.mubr.msk.f32.mxu1 %vm3159_vm3, %v3158_v1  ;;  %2945 = vmatprep.mubr.msk.f32.mxu0 %vm3159_vm3, %v3158_v1 }
 0x128   : > { %2939 = vmatpush3.msra.mxu1 %v2849_v35  ;;  %2944 = vmatpush3.msra.mxu0 %v838_v36  ;;  %v1386_v35 = vld [vmem:[#allocation9 + $0x68] sm:$0xff]  ;;  %v1388_v36 = vld [vmem:[#allocation9 + $0x78] sm:$0xff] }
 0x129   : > { %2948 = vmatprep.subr.mxu1 %v3158_v1  ;;  %2953 = vmatprep.subr.mxu0 %v3158_v1 }
 0x1e5   : > { %v753_v37 = vpop.f32.mrf.mxu1  ;;  %v826_v38 = vpop.f32.mrf.mxu0 }
 0x1e6   : > { %v830_v39 = vmax.f32 %v753_v37, %v826_v38  ;;  %v1385_v37 = vld [vmem:[#allocation9 + $0x60] sm:$0xff]  ;;  %v1387_v38 = vld [vmem:[#allocation9 + $0x70] sm:$0xff] }
 0x1e7   : > { %v2930_v40 = vpop.f32.mrf.mxu1  ;;  %v2937_v41 = vpop.f32.mrf.mxu0 }
 0x1e8   : > { %836 = vst.msk [vmem:[#allocation3 + $0x8] sm:$0xff] %vm831_vm7, %v830_v39  ;;  %v1378_v39 = vld [vmem:[#allocation9 + $0x28] sm:$0xff]  ;;  %v1380_v40 = vld [vmem:[#allocation9 + $0x38] sm:$0xff]  ;;  %v1377_v41 = vld [vmem:[#allocation9 + $0x20] sm:$0xff] }
 0x1ef   : > { %v839_v43 = vld [vmem:[#allocation3 + $0x7] sm:$0xff] }
 0x1f0   : > { %v837_v44 = vld [vmem:[#allocation3 + $0x6] sm:$0xff]  ;;  %2941 = vmatmul.mubr.msk.f32.vlgmr.msra.gmra.mxu1 %vm831_vm7, %v839_v43  ;;  %v1990_v43 = vld [vmem:[#allocation9 + $0x148] sm:$0xff] }
 0x1f1   : > { %2946 = vmatmul.mubr.msk.f32.vlgmr.msra.gmra.mxu0 %vm831_vm7, %v837_v44  ;;  %2949 = vmatpush3.msra.mxu1 %v2852_v42  ;;  %v988_v47 = vld [vmem:[#allocation3 + $0x8] sm:$0xff]  ;;  %v1379_v42 = vld [vmem:[#allocation9 + $0x30] sm:$0xff]  ;;  %v1992_v44 = vld [vmem:[#allocation9 + $0x158] sm:$0xff] }
 0x1f2   : > { %2950 = vmatprep.mubr.msk.f32.mxu1 %vm3159_vm3, %v3158_v1  ;;  %2954 = vmatpush3.msra.mxu0 %v2854_v45  ;;  %v1065_v48 = vld [vmem:[#allocation3 + $0x9] sm:$0xff] }
 0x1f3   : > { %2955 = vmatprep.mubr.msk.f32.mxu0 %vm3159_vm3, %v3158_v1  ;;  %2958 = vmatprep.subr.mxu1 %v3158_v1  ;;  %v1142_v49 = vld [vmem:[#allocation3 + $0xa] sm:$0xff] }
 0x1f4   : > { %2963 = vmatprep.subr.mxu0 %v3158_v1  ;;  %2951 = vmatmul.mubr.msk.f32.vlgmr.msra.gmra.mxu1 %vm831_vm7, %v988_v47  ;;  %v1989_v45 = vld [vmem:[#allocation9 + $0x140] sm:$0xff]  ;;  %v1982_v47 = vld [vmem:[#allocation9 + $0x108] sm:$0xff] }
 0x1f5   : > { %2956 = vmatmul.mubr.msk.f32.vlgmr.msra.gmra.mxu0 %vm831_vm7, %v1065_v48  ;;  %2959 = vmatpush3.msra.mxu1 %v2856_v46  ;;  %v1991_v46 = vld [vmem:[#allocation9 + $0x150] sm:$0xff]  ;;  %v1984_v48 = vld [vmem:[#allocation9 + $0x118] sm:$0xff] }
 0x1f6   : > { %2960 = vmatprep.mubr.msk.f32.mxu1 %vm3159_vm3, %v3158_v1  ;;  %2968 = vmatprep.subr.mxu1 %v3158_v1 }
 0x1f7   : > { %2965 = vmatprep.mubr.msk.f32.mxu0 %vm3159_vm3, %v3158_v1 }
 0x1f8   : > { %2961 = vmatmul.mubr.msk.f32.vlgmr.msra.gmra.mxu1 %vm831_vm7, %v1142_v49  ;;  %v1981_v49 = vld [vmem:[#allocation9 + $0x100] sm:$0xff] }
 0x1f9   : > { %2970 = vmatprep.mubr.msk.f32.mxu1 %vm3159_vm3, %v3158_v1 }
 0x2b0   : > { %v911_v50 = vpop.f32.mrf.mxu1 }
 0x2b1   : > { %v984_v51 = vpop.f32.mrf.mxu0 }
 0x2b2   : > { %v2942_v52 = vpop.f32.mrf.mxu1  ;;  %v985_v54 = vadd.f32 %v984_v51, %v911_v50  ;;  %v1983_v50 = vld [vmem:[#allocation9 + $0x110] sm:$0xff] }
 0x2b3   : > { %v2947_v53 = vpop.f32.mrf.mxu0  ;;  %v1994_v52 = vld [vmem:[#allocation9 + $0x168] sm:$0xff] }
 0x2b4   : > { %v1060_v55 = vpop.f32.mrf.mxu1  ;;  %v1996_v53 = vld [vmem:[#allocation9 + $0x178] sm:$0xff] }
 0x2b5   : > { %v1137_v56 = vpop.f32.mrf.mxu0  ;;  %v1064_v57 = vadd.f32 %v1060_v55, %v985_v54  ;;  %v1993_v54 = vld [vmem:[#allocation9 + $0x160] sm:$0xff]  ;;  %v1995_v55 = vld [vmem:[#allocation9 + $0x170] sm:$0xff] }
 0x2b6   : > { %v2952_v58 = vpop.f32.mrf.mxu1 }
 0x2b7   : > { %v2957_v59 = vpop.f32.mrf.mxu0  ;;  %v1141_v60 = vadd.f32 %v1137_v56, %v1064_v57  ;;  %v1986_v56 = vld [vmem:[#allocation9 + $0x128] sm:$0xff]  ;;  %v1988_v57 = vld [vmem:[#allocation9 + $0x138] sm:$0xff]  ;;  %v1985_v58 = vld [vmem:[#allocation9 + $0x120] sm:$0xff] }
 0x2b8   : > { %v1214_v61 = vpop.f32.mrf.mxu1  ;;  %v1987_v59 = vld [vmem:[#allocation9 + $0x130] sm:$0xff] }
 0x2b9   : > { %v1218_v63 = vadd.f32 %v1214_v61, %v1141_v60  ;;  %v2302_v60 = vld [vmem:[#allocation9 + $0x1c8] sm:$0xff]  ;;  %v2304_v61 = vld [vmem:[#allocation9 + $0x1d8] sm:$0xff] }
 0x2ba   : > { %v2962_v0 = vpop.f32.mrf.mxu1 }
 0x2bb   : > { %v1226_v2 = vadd.f32 %v2858_v62, %v1218_v63  ;;  %v2301_v62 = vld [vmem:[#allocation9 + $0x1c0] sm:$0xff]  ;;  %v2303_v63 = vld [vmem:[#allocation9 + $0x1d0] sm:$0xff]  ;;  %v2294_v0 = vld [vmem:[#allocation9 + $0x188] sm:$0xff] }
 0x2bd   : > { %v1227_v3 = vmax.f32 %v1226_v2, 0.0  ;;  %v2296_v2 = vld [vmem:[#allocation9 + $0x198] sm:$0xff] }
 0x2bf   : > { %2964 = vmatpush3.msra.mxu0 %v1227_v3  ;;  %2969 = vmatpush3.msra.mxu1 %v1227_v3  ;;  %v2293_v3 = vld [vmem:[#allocation9 + $0x180] sm:$0xff] }
 0x2c0   : > { %2966 = vmatmul.mubr.msk.f32.vlgmr.msra.gmra.mxu0 %vm831_vm7, %v3340_v33  ;;  %2971 = vmatmul.mubr.msk.f32.vlgmr.msra.gmra.mxu1 %vm831_vm7, %v3343_v34  ;;  %v1373_v33 = vld [vmem:[#allocation9] sm:$0xff]  ;;  %v1375_v34 = vld [vmem:[#allocation9 + $0x10] sm:$0xff] }
 0x2c1   : > { %1474 = vmatprep.mubr.f32.mxu0 %v3158_v1  ;;  %1545 = vmatprep.mubr.f32.mxu1 %v3158_v1 }
 0x2c2   : > { %1438 = vmatprep.subr.mxu0 %v1399_v4  ;;  %1509 = vmatprep.subr.mxu1 %v1401_v5  ;;  %v2295_v4 = vld [vmem:[#allocation9 + $0x190] sm:$0xff] }
 0x2c3   : > { %1439 = vmatpush1.msra.mxu0 %v1398_v6  ;;  %1510 = vmatpush1.msra.mxu1 %v1400_v7  ;;  %v2306_v6 = vld [vmem:[#allocation9 + $0x1e8] sm:$0xff]  ;;  %v2308_v7 = vld [vmem:[#allocation9 + $0x1f8] sm:$0xff] }
 0x2c4   : > { %1440 = vmatprep.subr.mxu0 %v1391_v8  ;;  %1511 = vmatprep.subr.mxu1 %v1393_v9  ;;  %v2305_v8 = vld [vmem:[#allocation9 + $0x1e0] sm:$0xff]  ;;  %v2307_v9 = vld [vmem:[#allocation9 + $0x1f0] sm:$0xff] }
 0x2c5   : > { %1441 = vmatpush1.msra.mxu0 %v1390_v10  ;;  %1512 = vmatpush1.msra.mxu1 %v1392_v11  ;;  %v2298_v10 = vld [vmem:[#allocation9 + $0x1a8] sm:$0xff]  ;;  %v2300_v11 = vld [vmem:[#allocation9 + $0x1b8] sm:$0xff] }
 0x2c6   : > { %1580 = vmatprep.subr.mxu0 %v1403_v12  ;;  %1651 = vmatprep.subr.mxu1 %v1405_v13  ;;  %v2297_v12 = vld [vmem:[#allocation9 + $0x1a0] sm:$0xff]  ;;  %v2299_v13 = vld [vmem:[#allocation9 + $0x1b0] sm:$0xff] }
 0x380   : > { %v1296_v15 = vpop.f32.mrf.mxu0  ;;  %v1368_v16 = vpop.f32.mrf.mxu1 }
 0x381   : > { %v3404_v17 = vmax.f32 %v1296_v15, %v1368_v16 }
 0x382   : > { %v2967_v18 = vpop.f32.mrf.mxu0  ;;  %v2972_v19 = vpop.f32.mrf.mxu1 }
 0x383   : > { %v1407_v20 = vrot.slane %v3404_v17, 1  ;;  %v1997_v51 = vrot.slane %v3404_v17, 2  ;;  %v2309_v5 = vrot.slane %v3404_v17, 3 }
 0x385   : > { %2861 = vmatmul.mubr.msk.f32.vlgmr.msra.gmra.mxu0 %vm683_vm6, %v1407_v20  ;;  %2862 = vmatmul.mubr.msk.f32.vlgmr.msra.gmra.mxu1 %vm683_vm6, %v1407_v20 }
 0x386   : > { %1581 = vmatpush1.msra.mxu0 %v1402_v21  ;;  %1652 = vmatpush1.msra.mxu1 %v1404_v22 }
 0x387   : > { %1582 = vmatprep.subr.mxu0 %v1395_v23  ;;  %1653 = vmatprep.subr.mxu1 %v1397_v24 }
 0x388   : > { %1583 = vmatpush1.msra.mxu0 %v1394_v25  ;;  %1616 = vmatprep.mubr.f32.mxu0 %v3158_v1 }
 0x389   : > { %1654 = vmatpush1.msra.mxu1 %v1396_v26  ;;  %1687 = vmatprep.mubr.f32.mxu1 %v3158_v1 }
 0x38a   : > { %2863 = vmatmul.mubr.msk.f32.vlgmr.msra.gmra.mxu0 %vm683_vm6, %v1407_v20  ;;  %2864 = vmatmul.mubr.msk.f32.vlgmr.msra.gmra.mxu1 %vm683_vm6, %v1407_v20 }
 0x38b   : > { %1724 = vmatprep.subr.mxu0 %v1382_v27  ;;  %1795 = vmatprep.subr.mxu1 %v1384_v28 }
 0x38c   : > { %1725 = vmatpush1.msra.mxu0 %v1381_v29  ;;  %1796 = vmatpush1.msra.mxu1 %v1383_v30 }
 0x38d   : > { %1726 = vmatprep.subr.mxu0 %v1374_v31  ;;  %1797 = vmatprep.subr.mxu1 %v1376_v32 }
 0x38e   : > { %1727 = vmatpush1.msra.mxu0 %v1373_v33  ;;  %1760 = vmatprep.mubr.f32.mxu0 %v3158_v1 }
 0x38f   : > { %1798 = vmatpush1.msra.mxu1 %v1375_v34  ;;  %1831 = vmatprep.mubr.f32.mxu1 %v3158_v1  ;;  %v2608_v34 = vsub.s32 0, %v3333_v14 }
 0x390   : > { %2865 = vmatmul.mubr.msk.f32.vlgmr.msra.gmra.mxu0 %vm683_vm6, %v3404_v17  ;;  %2866 = vmatmul.mubr.msk.f32.vlgmr.msra.gmra.mxu1 %vm683_vm6, %v3404_v17 }
 0x391   : > { %1866 = vmatprep.subr.mxu0 %v1386_v35  ;;  %1937 = vmatprep.subr.mxu1 %v1388_v36 }
 0x392   : > { %1867 = vmatpush1.msra.mxu0 %v1385_v37  ;;  %1938 = vmatpush1.msra.mxu1 %v1387_v38  ;;  %v3451_v37 = vld [vmem:[%s3505_s6] sm:$0xff]  ;;  %v2616_v38 = vsub.s32 2, %v3333_v14 }
 0x393   : > { %1868 = vmatprep.subr.mxu0 %v1378_v39  ;;  %1939 = vmatprep.subr.mxu1 %v1380_v40  ;;  %v2612_v39 = vsub.s32 1, %v3333_v14 }
 0x394   : > { %1869 = vmatpush1.msra.mxu0 %v1377_v41  ;;  %1902 = vmatprep.mubr.f32.mxu0 %v3158_v1 }
 0x395   : > { %1940 = vmatpush1.msra.mxu1 %v1379_v42  ;;  %1973 = vmatprep.mubr.f32.mxu1 %v3158_v1  ;;  %v2620_v42 = vsub.s32 3, %v3333_v14 }
 0x396   : > { %2867 = vmatmul.mubr.msk.f32.vlgmr.msra.gmra.mxu0 %vm683_vm6, %v3404_v17  ;;  %2868 = vmatmul.mubr.msk.f32.vlgmr.msra.gmra.mxu1 %vm683_vm6, %v3404_v17 }
 0x397   : > { %2028 = vmatprep.subr.mxu0 %v1990_v43  ;;  %2099 = vmatprep.subr.mxu1 %v1992_v44 }
 0x398   : > { %2029 = vmatpush1.msra.mxu0 %v1989_v45  ;;  %2100 = vmatpush1.msra.mxu1 %v1991_v46  ;;  %v2609_v45 = vrot.slane %v3451_v37, %v2608_v34  ;;  %v3457_v46 = vld [vmem:[#allocation10] sm:$0xff] }
 0x399   : > { %2030 = vmatprep.subr.mxu0 %v1982_v47  ;;  %2101 = vmatprep.subr.mxu1 %v1984_v48  ;;  %v2617_v47 = vrot.slane %v3451_v37, %v2616_v38  ;;  %v2613_v48 = vrot.slane %v3451_v37, %v2612_v39 }
 0x39a   : > { %2031 = vmatpush1.msra.mxu0 %v1981_v49  ;;  %2064 = vmatprep.mubr.f32.mxu0 %v3158_v1  ;;  %v2624_v49 = vsub.s32 4, %v3333_v14 }
 0x39b   : > { %2102 = vmatpush1.msra.mxu1 %v1983_v50  ;;  %2135 = vmatprep.mubr.f32.mxu1 %v3158_v1  ;;  %v2632_v50 = vsub.s32 6, %v3333_v14 }
 0x39c   : > { %2869 = vmatmul.mubr.msk.f32.vlgmr.msra.gmra.mxu0 %vm683_vm6, %v1997_v51  ;;  %2870 = vmatmul.mubr.msk.f32.vlgmr.msra.gmra.mxu1 %vm683_vm6, %v1997_v51 }
 0x39d   : > { %2170 = vmatprep.subr.mxu0 %v1994_v52  ;;  %2241 = vmatprep.subr.mxu1 %v1996_v53 }
 0x39e   : > { %2171 = vmatpush1.msra.mxu0 %v1993_v54  ;;  %2242 = vmatpush1.msra.mxu1 %v1995_v55 }
 0x39f   : > { %2172 = vmatprep.subr.mxu0 %v1986_v56  ;;  %2243 = vmatprep.subr.mxu1 %v1988_v57  ;;  %v2667_v56 = vrot.slane %v3457_v46, %v2608_v34 }
 0x3a0   : > { %2173 = vmatpush1.msra.mxu0 %v1985_v58  ;;  %2206 = vmatprep.mubr.f32.mxu0 %v3158_v1  ;;  %v2675_v58 = vrot.slane %v3457_v46, %v2616_v38 }
 0x3a1   : > { %2244 = vmatpush1.msra.mxu1 %v1987_v59  ;;  %2277 = vmatprep.mubr.f32.mxu1 %v3158_v1  ;;  %v2621_v59 = vrot.slane %v3451_v37, %v2620_v42 }
 0x3a2   : > { %2871 = vmatmul.mubr.msk.f32.vlgmr.msra.gmra.mxu0 %vm683_vm6, %v1997_v51  ;;  %2872 = vmatmul.mubr.msk.f32.vlgmr.msra.gmra.mxu1 %vm683_vm6, %v1997_v51 }
 0x3a3   : > { %2340 = vmatprep.subr.mxu0 %v2302_v60  ;;  %2411 = vmatprep.subr.mxu1 %v2304_v61 }
 0x3a4   : > { %2341 = vmatpush1.msra.mxu0 %v2301_v62  ;;  %2412 = vmatpush1.msra.mxu1 %v2303_v63 }
 0x3a5   : > { %2342 = vmatprep.subr.mxu0 %v2294_v0  ;;  %2413 = vmatprep.subr.mxu1 %v2296_v2 }
 0x3a6   : > { %2343 = vmatpush1.msra.mxu0 %v2293_v3  ;;  %2376 = vmatprep.mubr.f32.mxu0 %v3158_v1  ;;  %v2625_v3 = vrot.slane %v3451_v37, %v2624_v49 }
 0x3a7   : > { %2414 = vmatpush1.msra.mxu1 %v2295_v4  ;;  %2447 = vmatprep.mubr.f32.mxu1 %v3158_v1  ;;  %v2633_v4 = vrot.slane %v3451_v37, %v2632_v50 }
 0x3a8   : > { %2873 = vmatmul.mubr.msk.f32.vlgmr.msra.gmra.mxu0 %vm683_vm6, %v2309_v5  ;;  %2874 = vmatmul.mubr.msk.f32.vlgmr.msra.gmra.mxu1 %vm683_vm6, %v2309_v5 }
 0x3a9   : > { %2482 = vmatprep.subr.mxu0 %v2306_v6  ;;  %2553 = vmatprep.subr.mxu1 %v2308_v7  ;;  %v2636_v6 = vsub.s32 7, %v3333_v14 }
 0x3aa   : > { %2483 = vmatpush1.msra.mxu0 %v2305_v8  ;;  %2554 = vmatpush1.msra.mxu1 %v2307_v9 }
 0x3ab   : > { %2484 = vmatprep.subr.mxu0 %v2298_v10  ;;  %2555 = vmatprep.subr.mxu1 %v2300_v11 }
 0x3ac   : > { %2485 = vmatpush1.msra.mxu0 %v2297_v12  ;;  %2518 = vmatprep.mubr.f32.mxu0 %v3158_v1 }
 0x3ad   : > { %2556 = vmatpush1.msra.mxu1 %v2299_v13  ;;  %2589 = vmatprep.mubr.f32.mxu1 %v3158_v1  ;;  %v2671_v13 = vrot.slane %v3457_v46, %v2612_v39 }
 0x3ae   : > { %2875 = vmatmul.mubr.msk.f32.vlgmr.msra.gmra.mxu0 %vm683_vm6, %v2309_v5  ;;  %2876 = vmatmul.mubr.msk.f32.vlgmr.msra.gmra.mxu1 %vm683_vm6, %v2309_v5  ;;  %v2628_v5 = vsub.s32 5, %v3333_v14 }
 0x445   : > { %v1476_v15 = vpop.f32.mrf.mxu0  ;;  %v1547_v16 = vpop.f32.mrf.mxu1 }
 0x447   : > { %v1478_v17 = vpop.f32.mrf.mxu0  ;;  %v1549_v18 = vpop.f32.mrf.mxu1 }
 0x44a   : > { %v1618_v19 = vpop.f32.mrf.mxu0  ;;  %v1689_v20 = vpop.f32.mrf.mxu1 }
 0x44c   : > { %v3443_v21 = vpop.f32.mrf.mxu0  ;;  %v3445_v22 = vpop.f32.mrf.mxu1 }
 0x450   : > { %v1762_v23 = vpop.f32.mrf.mxu0  ;;  %v1833_v24 = vpop.f32.mrf.mxu1 }
 0x451   : > { %v1763_v43 = vadd.f32 %v1762_v23, %v1476_v15  ;;  %v1834_v44 = vadd.f32 %v1833_v24, %v1547_v16  ;;  %v2679_v15 = vrot.slane %v3457_v46, %v2620_v42 }
 0x452   : > { %v1764_v25 = vpop.f32.mrf.mxu0  ;;  %v1835_v26 = vpop.f32.mrf.mxu1 }
 0x453   : > { %v1765_v51 = vadd.f32 %v1764_v25, %v1478_v17  ;;  %v1836_v52 = vadd.f32 %v1835_v26, %v1549_v18 }
 0x456   : > { %v1904_v27 = vpop.f32.mrf.mxu0  ;;  %v1975_v1 = vpop.f32.mrf.mxu1 }
 0x457   : > { %v1905_v11 = vadd.f32 %v1904_v27, %v1618_v19  ;;  %v1976_v12 = vadd.f32 %v1975_v1, %v1689_v20  ;;  %v2629_v20 = vrot.slane %v3451_v37, %v2628_v5 }
 0x458   : > { %v1906_v28 = vpop.f32.mrf.mxu0  ;;  %v1977_v29 = vpop.f32.mrf.mxu1 }
 0x459   : > { %v1907_v24 = vadd.f32 %v1906_v28, %v3443_v21  ;;  %v1978_v25 = vadd.f32 %v1977_v29, %v3445_v22  ;;  %v2683_v21 = vrot.slane %v3457_v46, %v2624_v49  ;;  %v2637_v22 = vrot.slane %v3451_v37, %v2636_v6 }
 0x45a   : > { %v2691_v37 = vrot.slane %v3457_v46, %v2632_v50 }
 0x45c   : > { %v2066_v30 = vpop.f32.mrf.mxu0  ;;  %v2137_v31 = vpop.f32.mrf.mxu1 }
 0x45d   : > { %v2284_v53 = vadd.f32 %v2066_v30, %v1763_v43  ;;  %v2286_v54 = vadd.f32 %v2137_v31, %v1834_v44 }
 0x45e   : > { %v2068_v32 = vpop.f32.mrf.mxu0  ;;  %v2139_v33 = vpop.f32.mrf.mxu1 }
 0x45f   : > { %v2285_v60 = vadd.f32 %v2068_v32, %v1765_v51  ;;  %v2287_v61 = vadd.f32 %v2139_v33, %v1836_v52 }
 0x462   : > { %v2208_v35 = vpop.f32.mrf.mxu0  ;;  %v2279_v36 = vpop.f32.mrf.mxu1 }
 0x463   : > { %v2288_v26 = vadd.f32 %v2208_v35, %v1905_v11  ;;  %v2290_v30 = vadd.f32 %v2279_v36, %v1976_v12 }
 0x464   : > { %v2210_v40 = vpop.f32.mrf.mxu0  ;;  %v2281_v41 = vpop.f32.mrf.mxu1 }
 0x465   : > { %v2289_v27 = vadd.f32 %v2210_v40, %v1907_v24  ;;  %v2291_v1 = vadd.f32 %v2281_v41, %v1978_v25 }
 0x468   : > { %v2378_v55 = vpop.f32.mrf.mxu0  ;;  %v2449_v57 = vpop.f32.mrf.mxu1 }
 0x469   : > { %v2596_v62 = vadd.f32 %v2378_v55, %v2284_v53  ;;  %v2598_v63 = vadd.f32 %v2449_v57, %v2286_v54  ;;  %v2687_v53 = vrot.slane %v3457_v46, %v2628_v5 }
 0x46a   : > { %v2380_v0 = vpop.f32.mrf.mxu0  ;;  %v2451_v2 = vpop.f32.mrf.mxu1 }
 0x46b   : > { %v2646_v7 = vadd.f32 %v2609_v45, %v2596_v62  ;;  %v2648_v8 = vadd.f32 %v2617_v47, %v2598_v63  ;;  %v2597_v9 = vadd.f32 %v2380_v0, %v2285_v60  ;;  %v2599_v10 = vadd.f32 %v2451_v2, %v2287_v61 }
 0x46c   : > { %v2695_v61 = vrot.slane %v3457_v46, %v2636_v6 }
 0x46d   : > { %v2654_v16 = vmax.f32 %v2646_v7, 0.0  ;;  %v2656_v17 = vmax.f32 %v2648_v8, 0.0  ;;  %v2647_v18 = vadd.f32 %v2613_v48, %v2597_v9  ;;  %v2649_v23 = vadd.f32 %v2621_v59, %v2599_v10  ;;  %v2730_v10 = vld [vmem:[#allocation4] sm:$0x1] }
 0x46e   : > { %v2520_v31 = vpop.f32.mrf.mxu0  ;;  %v2591_v32 = vpop.f32.mrf.mxu1 }
 0x46f   : > { %v2704_v33 = vmul.f32 %v2667_v56, %v2654_v16  ;;  %v2655_v34 = vmax.f32 %v2647_v18, 0.0  ;;  %v2657_v19 = vmax.f32 %v2649_v23, 0.0  ;;  %v2600_v38 = vadd.f32 %v2520_v31, %v2288_v26 }
 0x470   : > { %v2602_v39 = vadd.f32 %v2591_v32, %v2290_v30  ;;  %v2522_v42 = vpop.f32.mrf.mxu0  ;;  %v2593_v43 = vpop.f32.mrf.mxu1  ;;  %v2706_v44 = vmul.f32 %v2675_v58, %v2656_v17 }
 0x471   : > { %v2705_v45 = vmul.f32 %v2671_v13, %v2655_v34  ;;  %v2650_v28 = vadd.f32 %v2625_v3, %v2600_v38  ;;  %v2601_v35 = vadd.f32 %v2522_v42, %v2289_v27  ;;  %v2603_v36 = vadd.f32 %v2593_v43, %v2291_v1 }
 0x472   : > { %v2652_v29 = vadd.f32 %v2633_v4, %v2602_v39  ;;  %v2713_v47 = vsel %vm2712_vm9, %v2704_v33, 0.0  ;;  %v2707_v40 = vmul.f32 %v2679_v15, %v2657_v19  ;;  %v2716_v54 = vsel %vm2712_vm9, %v2706_v44, 0.0 }
 0x473   : > { %v2714_v48 = vsel %vm2712_vm9, %v2705_v45, 0.0  ;;  %v2658_v51 = vmax.f32 %v2650_v28, 0.0  ;;  %v2651_v52 = vadd.f32 %v2629_v20, %v2601_v35  ;;  %v2653_v49 = vadd.f32 %v2637_v22, %v2603_v36 }
 0x474   : > { %v2715_v41 = vadd.f32 %v2714_v48, %v2713_v47  ;;  %v2660_v55 = vmax.f32 %v2652_v29, 0.0  ;;  %v2718_v59 = vsel %vm2712_vm9, %v2707_v40, 0.0 }
 0x475   : > { %v2708_v56 = vmul.f32 %v2683_v21, %v2658_v51  ;;  %v2659_v57 = vmax.f32 %v2651_v52, 0.0  ;;  %v2661_v60 = vmax.f32 %v2653_v49, 0.0 }
 0x476   : > { %v2717_v58 = vadd.f32 %v2716_v54, %v2715_v41  ;;  %v2710_v0 = vmul.f32 %v2691_v37, %v2660_v55 }
 0x477   : > { %v2709_v62 = vmul.f32 %v2687_v53, %v2659_v57  ;;  %v2720_v2 = vsel %vm2712_vm9, %v2708_v56, 0.0  ;;  %v2711_v4 = vmul.f32 %v2695_v61, %v2661_v60 }
 0x478   : > { %v2719_v63 = vadd.f32 %v2718_v59, %v2717_v58  ;;  %v2724_v50 = vsel %vm2712_vm9, %v2710_v0, 0.0 }
 0x479   : > { %v2722_v14 = vsel %vm2712_vm9, %v2709_v62, 0.0  ;;  %v2726_v8 = vsel %vm2712_vm9, %v2711_v4, 0.0 }
 0x47a   : > { %v2721_v3 = vadd.f32 %v2720_v2, %v2719_v63 }
 0x47c   : > { %v2723_v5 = vadd.f32 %v2722_v14, %v2721_v3 }
 0x47e   : > { %v2725_v7 = vadd.f32 %v2724_v50, %v2723_v5 }
 0x480   : > { %v2727_v9 = vadd.f32 %v2726_v8, %v2725_v7 }
 0x482   : > { %2728 = vadd.xlane.f32.xlu0 %v2727_v9 }
 0x50b   : > { %v2729_v46 = vpop.xlane.xlu0 %2728 }
 0x50c   : > { %v2731_v6 = vadd.f32 %v2730_v10, %v2729_v46 }
 0x50e   : > { %2733 = vst.msk [vmem:[%s385_s8] sm:$0x1] %vm2732_vm10, %v2731_v6 }
 0x50f PF: > { %s24_s11 = sadd.s32 1, %s3149_s11  }
 0x510   : > { %p21_p2 = scmp.ge.s32.totalorder %s24_s11, 4  }
 0x512   :  { %23 = sbr.rel (!%p21_p2) target bundleno = 6 (0x6), region = 112 }
 0x517   :  { %2751 = vsyncpa [#allocation6], 1 }
 0x518   :  { %2753 = vsyncpa [#allocation6 + $0x1], 1 }
 0x519   :  { %2754 = vsyncpa [#allocation8], 1 }
 0x51a   :  { %2755 = vsyncpa [#allocation11], 1 }

</bundles_post_ra>
